<compile_context>
chip_gen: v7x
topology: tpu7x:2x2x1
jax: 0.10.0
libtpu: 0.0.40
codegen_flags: <defaults>
</compile_context>

<pallas_src>
import math

import jax
import jax.numpy as jnp
from jax.experimental import pallas as pl
from jax.experimental.pallas import tpu as pltpu

_INV_SQRT2 = 1.0 / math.sqrt(2.0)


def _gated_kernel(x_ref, w_ref, b_ref, o_ref):
    """One grid step: (tm, H) @ (H, 2*tn) -> bias -> gelu(gate)*up -> (tm, tn).

    w_ref columns are laid out [gate_block | up_block] so a single MXU matmul
    produces both halves of this output tile.
    """
    tn = o_ref.shape[1]

    # Native-dtype operands on the MXU, f32 accumulation.
    gu = jnp.dot(x_ref[...], w_ref[...], preferred_element_type=jnp.float32)
    gu = gu + b_ref[...]                       # f32 bias add

    gate = gu[:, :tn]
    up = gu[:, tn:]

    # Exact (erf-based) GELU, matching torch.nn.functional.gelu default.
    # TODO(synk): if accuracy budget allows, a tanh-GELU / bf16 epilogue would
    # move work off the f32 VALU slot on v6e/v7x.
    act = 0.5 * gate * (1.0 + jax.lax.erf(gate * _INV_SQRT2))

    o_ref[...] = (act * up).astype(o_ref.dtype)


def _round_up(x: int, m: int) -> int:
    return ((x + m - 1) // m) * m


def _pick_tn(i_pad: int, requested: int) -> int:
    """Largest multiple-of-128 tile <= requested that divides the padded I."""
    requested = max(128, (requested // 128) * 128)
    for cand in sorted({requested, 1024, 512, 256, 128}, reverse=True):
        if cand <= requested and i_pad % cand == 0:
            return cand
    return 128  # i_pad is a multiple of 128, so this always divides


def _fuse_gate_up(w_gate, w_up, b_gate, b_up, i_pad: int, tn: int):
    """Interleave gate/up columns per tn block -> [H, 2*i_pad], bias -> [1, 2*i_pad] f32.

    Block j of the fused matrix = [gate cols j*tn:(j+1)*tn | up cols j*tn:(j+1)*tn].
    With tn == i_pad (resident path) this is just a plain [gate | up] concat.
    Called ONCE at weight-load time, never in the forward path.
    """
    H, I = w_gate.shape
    nb = i_pad // tn

    def pad_cols(a):
        return a if I == i_pad else jnp.pad(a, ((0, 0), (0, i_pad - I)))

    def pad_vec(v):
        return v if I == i_pad else jnp.pad(v, ((0, i_pad - I),))

    wg = pad_cols(w_gate).reshape(H, nb, tn)
    wu = pad_cols(w_up).reshape(H, nb, tn)
    w_fused = jnp.stack([wg, wu], axis=2).reshape(H, 2 * i_pad)

    bg = pad_vec(b_gate).astype(jnp.float32).reshape(nb, tn)
    bu = pad_vec(b_up).astype(jnp.float32).reshape(nb, tn)
    b_fused = jnp.stack([bg, bu], axis=1).reshape(1, 2 * i_pad)
    return w_fused, b_fused


def make_bert_gated_intermediate(w_gate, w_up, b_gate=None, b_up=None, *,
                                 tm: int = 512, tn: int = 512,
                                 vmem_budget_bytes: int = 48 * 1024 * 1024,
                                 single_buffer_weights: bool = False):
    """Build the forward closure. w_gate/w_up: [H, I]; b_gate/b_up: [I] or None.

    Weight fusion / padding runs once here; the returned `forward(hidden_states)`
    only pads the ragged token dim and launches the kernel.
    """
    H, I = w_gate.shape
    if b_gate is None:
        b_gate = jnp.zeros((I,), w_gate.dtype)
    if b_up is None:
        b_up = jnp.zeros((I,), w_up.dtype)

    i_pad = _round_up(I, 128)                 # lane-dense output stores
    itemsize = jnp.dtype(w_gate.dtype).itemsize

    # Estimate VMEM for the resident-weight path at the largest token tile:
    # fused W (+f32 bias) buffers, double-buffered x/out tiles, and the
    # (tm, 2*i_pad) f32 epilogue temporary.  Budget is per-TensorCore (v7x!).
    w_bufs = 1 if single_buffer_weights else 2
    resident_bytes = (
        w_bufs * H * 2 * i_pad * itemsize
        + w_bufs * 2 * i_pad * 4
        + 2 * tm * H * itemsize
        + 2 * tm * i_pad * itemsize
        + tm * 2 * i_pad * 4
    )
    resident = resident_bytes <= vmem_budget_bytes

    tn_eff = i_pad if resident else _pick_tn(i_pad, tn)
    nb = i_pad // tn_eff

    # Hoisted weight/bias repack (once, at load time).
    w_fused, b_fused = _fuse_gate_up(w_gate, w_up, b_gate, b_up, i_pad, tn_eff)

    def _const_spec(shape):
        # Weight/bias block: index never changes -> DMA'd once.  Optionally
        # single-buffered (v7x 64 MiB per-TC budgeting for large models).
        if single_buffer_weights:
            return pl.BlockSpec(shape, lambda i: (0, 0),
                                pipeline_mode=pl.Buffered(1))
        return pl.BlockSpec(shape, lambda i: (0, 0))

    def forward(hidden_states):
        S, Hx = hidden_states.shape
        assert Hx == H, f"hidden dim mismatch: {Hx} vs {H}"

        # Sublane alignment: 16 for packed (bf16/fp8) outputs, 8 for f32.
        sub = 16 if jnp.dtype(hidden_states.dtype).itemsize < 4 else 8
        tm_eff = min(tm, _round_up(S, sub))
        s_pad = _round_up(S, tm_eff)

        x = hidden_states
        if s_pad != S:
            x = jnp.pad(x, ((0, s_pad - S), (0, 0)))

        if resident:
            # Weights live in VMEM for the whole call; grid only over tokens.
            grid = (s_pad // tm_eff,)
            in_specs = [
                pl.BlockSpec((tm_eff, H), lambda i: (i, 0)),          # x tile
                _const_spec((H, 2 * i_pad)),                          # fused W
                _const_spec((1, 2 * i_pad)),                          # fused bias
            ]
            out_specs = pl.BlockSpec((tm_eff, i_pad), lambda i: (i, 0))
            dims = ("parallel",)                 # megacore-shards tokens on v7x
            vmem_limit = 64 * 1024 * 1024
        else:
            # Streaming fallback: token axis INNERMOST so the weight block
            # index only changes on the outer axis (no re-DMA across tokens).
            grid = (nb, s_pad // tm_eff)
            in_specs = [
                pl.BlockSpec((tm_eff, H), lambda j, i: (i, 0)),       # x tile
                pl.BlockSpec((H, 2 * tn_eff), lambda j, i: (0, j)),   # W tile
                pl.BlockSpec((1, 2 * tn_eff), lambda j, i: (0, j)),   # bias tile
            ]
            out_specs = pl.BlockSpec((tm_eff, tn_eff), lambda j, i: (i, j))
            dims = ("parallel", "parallel")
            vmem_limit = 48 * 1024 * 1024

        out = pl.pallas_call(
            _gated_kernel,
            out_shape=jax.ShapeDtypeStruct((s_pad, i_pad), hidden_states.dtype),
            grid_spec=pltpu.PrefetchScalarGridSpec(
                num_scalar_prefetch=0,
                grid=grid,
                in_specs=in_specs,
                out_specs=out_specs,
            ),
            compiler_params=pltpu.CompilerParams(
                dimension_semantics=dims,
                vmem_limit_bytes=vmem_limit,
            ),
        )(x, w_fused, b_fused)

        out = out[:S] if s_pad != S else out
        return out[:, :I] if i_pad != I else out

    return forward


if __name__ == "__main__":
    # Small shapes consistent with the module: seq=16, hidden=64, intermediate=256.
    S, H, I = 16, 64, 256
    key = jax.random.PRNGKey(0)
    kx, kg, ku, kbg, kbu = jax.random.split(key, 5)

    # Production dtype: bf16 operands feed the MXU single-pass; accumulation is f32.
    dtype = jnp.bfloat16
    scale = 1.0 / math.sqrt(H)
    hidden_states = jax.random.normal(kx, (S, H), dtype=jnp.float32).astype(dtype)
    w_gate = (jax.random.normal(kg, (H, I), dtype=jnp.float32) * scale).astype(dtype)
    w_up = (jax.random.normal(ku, (H, I), dtype=jnp.float32) * scale).astype(dtype)
    b_gate = (jax.random.normal(kbg, (I,), dtype=jnp.float32) * 0.01).astype(dtype)
    b_up = (jax.random.normal(kbu, (I,), dtype=jnp.float32) * 0.01).astype(dtype)

    # Weight fusion happens once here (load time), not per forward call.
    forward = make_bert_gated_intermediate(w_gate, w_up, b_gate, b_up, tm=512)

    out = jax.block_until_ready(forward(hidden_states))

    # Reference on the same bf16-quantized operands, computed in f32.
    x32 = hidden_states.astype(jnp.float32)
    g32 = x32 @ w_gate.astype(jnp.float32) + b_gate.astype(jnp.float32)
    u32 = x32 @ w_up.astype(jnp.float32) + b_up.astype(jnp.float32)
    ref = jax.nn.gelu(g32, approximate=False) * u32

    assert out.shape == (S, I)
    assert out.dtype == dtype
    out32 = out.astype(jnp.float32)
    assert jnp.allclose(out32, ref, atol=5e-2, rtol=5e-2), float(
        jnp.max(jnp.abs(out32 - ref)))

    print("KERNEL_OK")
</pallas_src>

<mosaic_0001>
module attributes {stable_mosaic.version = 11 : i64} {
  func.func @_gated_kernel(%arg0: i32, %arg1: memref<16x64xbf16, #tpu.memory_space<vmem>>, %arg2: memref<64x512xbf16, #tpu.memory_space<vmem>>, %arg3: memref<1x512xf32, #tpu.memory_space<vmem>>, %arg4: memref<16x256xbf16, #tpu.memory_space<vmem>>) attributes {dimension_semantics = [#tpu.dimension_semantics<parallel>], iteration_bounds = array<i64: 1>, scalar_prefetch = 0 : i64, scratch_operands = 0 : i64, tpu.core_type = #tpu.core_type<tc>, window_params = [{transform_indices = @transform_0, window_bounds = array<i64: 16, 64>}, {pipeline_mode = #tpu.pipeline_mode<synchronous>, transform_indices = @transform_1, window_bounds = array<i64: 64, 512>}, {pipeline_mode = #tpu.pipeline_mode<synchronous>, transform_indices = @transform_2, window_bounds = array<i64: 1, 512>}, {transform_indices = @transform_3, window_bounds = array<i64: 16, 256>}]} {
    %c0 = arith.constant 0 : index
    %c0_0 = arith.constant 0 : index
    %0 = vector.load %arg1[%c0, %c0_0] : memref<16x64xbf16, #tpu.memory_space<vmem>>, vector<16x64xbf16>
    %c0_1 = arith.constant 0 : index
    %c0_2 = arith.constant 0 : index
    %1 = vector.load %arg2[%c0_1, %c0_2] : memref<64x512xbf16, #tpu.memory_space<vmem>>, vector<64x512xbf16>
    %cst = arith.constant dense<0.000000e+00> : vector<16x512xf32>
    %2 = tpu.matmul %0, %1, %cst {dimension_numbers = #tpu.dot_dimension_numbers<[1], [0], [0], [1], [0, 0, 1, 1], [], []>} : vector<16x64xbf16>, vector<64x512xbf16>, vector<16x512xf32> -> vector<16x512xf32>
    %c0_3 = arith.constant 0 : index
    %c0_4 = arith.constant 0 : index
    %3 = vector.load %arg3[%c0_3, %c0_4] : memref<1x512xf32, #tpu.memory_space<vmem>>, vector<1x512xf32>
    %4 = vector.broadcast %3 : vector<1x512xf32> to vector<16x512xf32>
    %5 = arith.addf %2, %4 : vector<16x512xf32>
    %6 = vector.extract_strided_slice %5 {offsets = [0, 0], sizes = [16, 256], strides = [1, 1]} : vector<16x512xf32> to vector<16x256xf32>
    %7 = vector.extract_strided_slice %5 {offsets = [0, 256], sizes = [16, 256], strides = [1, 1]} : vector<16x512xf32> to vector<16x256xf32>
    %cst_5 = arith.constant 5.000000e-01 : f32
    %8 = vector.broadcast %cst_5 : f32 to vector<16x256xf32>
    %9 = arith.mulf %8, %6 : vector<16x256xf32>
    %cst_6 = arith.constant 0.707106769 : f32
    %10 = vector.broadcast %cst_6 : f32 to vector<16x256xf32>
    %11 = arith.mulf %6, %10 : vector<16x256xf32>
    %12 = math.erf %11 : vector<16x256xf32>
    %cst_7 = arith.constant 1.000000e+00 : f32
    %13 = vector.broadcast %cst_7 : f32 to vector<16x256xf32>
    %14 = arith.addf %13, %12 : vector<16x256xf32>
    %15 = arith.mulf %9, %14 : vector<16x256xf32>
    %16 = arith.mulf %15, %7 : vector<16x256xf32>
    %17 = arith.truncf %16 : vector<16x256xf32> to vector<16x256xbf16>
    %c0_8 = arith.constant 0 : index
    %c0_9 = arith.constant 0 : index
    %18 = vector.load %arg4[%c0_8, %c0_9] : memref<16x256xbf16, #tpu.memory_space<vmem>>, vector<16x256xbf16>
    tpu.vector_store %arg4[%c0_8, %c0_9], %17 {strides = array<i32>} : memref<16x256xbf16, #tpu.memory_space<vmem>>, vector<16x256xbf16>,
    return
  }
  func.func @transform_0(%arg0: i32) -> (i32, i32) {
    %c0_i32 = arith.constant 0 : i32
    %c0_i32_0 = arith.constant 0 : i32
    return %arg0, %c0_i32 : i32, i32
  }
  func.func @transform_1(%arg0: i32) -> (i32, i32) {
    %c0_i32 = arith.constant 0 : i32
    %c0_i32_0 = arith.constant 0 : i32
    %c0_i32_1 = arith.constant 0 : i32
    return %c0_i32, %c0_i32_0 : i32, i32
  }
  func.func @transform_2(%arg0: i32) -> (i32, i32) {
    %c0_i32 = arith.constant 0 : i32
    %c0_i32_0 = arith.constant 0 : i32
    %c0_i32_1 = arith.constant 0 : i32
    return %c0_i32, %c0_i32_0 : i32, i32
  }
  func.func @transform_3(%arg0: i32) -> (i32, i32) {
    %c0_i32 = arith.constant 0 : i32
    %c0_i32_0 = arith.constant 0 : i32
    return %arg0, %c0_i32 : i32, i32
  }
}

</mosaic_0001>

<bundles_post_ra>
// kernel: tpu_custom_call.1
= control target key start
LH: loop header
LB: loop body
LE: loop exit
PB: predicated region body
PF: predicated region fallthrough
CT: control target
= control target key end

     0   :  { %8 = vsyncpa [#allocation3], 0  ;;  %s566_s0 = inlined_call_operand.hbm [shape: bf16[16,64], index: 0, kind: input, shape index: {}]   ;;  %s567_s1 = inlined_call_operand.hbm [shape: bf16[64,512], index: 1, kind: input, shape index: {}]   ;;  %s568_s2 = inlined_call_operand.hbm [shape: f32[1,512], index: 2, kind: input, shape index: {}]   ;;  %s569_s3 = inlined_call_operand.hbm [shape: bf16[16,256], index: 3, kind: output, shape index: {}]  }
   0x1   :  { %9 = vsyncpa [#allocation6], 0 }
   0x2   :  { %10 = vsyncpa [#allocation4], 0  ;;  %s487_s12 = smov [#allocation5]   ;;  %s393_s16 = scalar_lea.hbm %s567_s1, 2048 }
   0x3   :  { %s28_s13 = sshll.u32 %s487_s12, 4  ;;  %p394_p0 = scmp.ne.s32.totalorder %s567_s1, %s393_s16  ;;  %s29_s13 = int_to_ptr.vmem [resolvable:$true] %s28_s13 }
   0x4   :  { %p397_p1 = scmp.lt.u32.totalorder %s393_s16, %s567_s1 }
   0x6   :  { %p399_p2 = pnand %p397_p1, %p394_p0 }
   0x8   :  { %402 = shalt.err (!%p399_p2)
}
   0x9   :  { %s403_s21 = scalar_lea.vmem %s29_s13, 2048  ;;  %p408_p4 = scmp.lt.s32.totalorder %s29_s13, %s29_s13 }
   0xa   :  { %p404_p3 = scmp.ne.s32.totalorder %s29_s13, %s403_s21  ;;  %p409_p5 = scmp.lt.s32.totalorder %s403_s21, %s403_s21 }
   0xc   :  { %p410_p6 = por %p409_p5, %p408_p4 }
   0xe   :  { %p411_p7 = pnand %p410_p6, %p404_p3 }
  0x10   :  { %414 = shalt.err (!%p411_p7)
}
  0x11   :  { %s488_s22 = smov 256   ;;  %s489_s23 = smov 16  }
  0x12   :  { %34 = dma.hbm_to_vmem [thread:$0]  %s567_s1, 2048, %s29_s13, [#allocation6], %s488_s22, %s488_s22, %s489_s23  }
  0x13   :  { %s490_s26 = smov [#allocation2]   ;;  %s415_s30 = scalar_lea.hbm %s566_s0, 128 }
  0x14   :  { %s16_s27 = sshll.u32 %s490_s26, 4  ;;  %p416_p8 = scmp.ne.s32.totalorder %s566_s0, %s415_s30  ;;  %s17_s27 = int_to_ptr.vmem [resolvable:$true] %s16_s27 }
  0x15   :  { %p419_p9 = scmp.lt.u32.totalorder %s415_s30, %s566_s0 }
  0x17   :  { %p421_p10 = pnand %p419_p9, %p416_p8 }
  0x19   :  { %424 = shalt.err (!%p421_p10)
}
  0x1a   :  { %s425_s8 = scalar_lea.vmem %s17_s27, 128  ;;  %p430_p12 = scmp.lt.s32.totalorder %s17_s27, %s17_s27 }
  0x1b   :  { %p426_p11 = scmp.ne.s32.totalorder %s17_s27, %s425_s8  ;;  %p431_p13 = scmp.lt.s32.totalorder %s425_s8, %s425_s8 }
  0x1d   :  { %p432_p0 = por %p431_p13, %p430_p12 }
  0x1f   :  { %p433_p1 = pnand %p432_p0, %p426_p11 }
  0x21   :  { %436 = shalt.err (!%p433_p1)
}
  0x22   :  { %s491_s1 = smov 64   ;;  %s492_s9 = smov 4  }
  0x23   :  { %22 = dma.hbm_to_vmem [thread:$0]  %s566_s0, 128, %s17_s27, [#allocation3], %s491_s1, %s491_s1, %s492_s9  }
  0x24   :  { %s493_s12 = smov [#allocation7]   ;;  %s437_s16 = scalar_lea.hbm %s568_s2, 64 }
  0x25   :  { %s41_s13 = sshll.u32 %s493_s12, 4  ;;  %p438_p2 = scmp.ne.s32.totalorder %s568_s2, %s437_s16  ;;  %s42_s13 = int_to_ptr.vmem [resolvable:$true] %s41_s13 }
  0x26   :  { %p441_p3 = scmp.lt.u32.totalorder %s437_s16, %s568_s2 }
  0x28   :  { %p443_p4 = pnand %p441_p3, %p438_p2 }
  0x2a   :  { %446 = shalt.err (!%p443_p4)
}
  0x2b   :  { %s447_s21 = scalar_lea.vmem %s42_s13, 64  ;;  %p452_p6 = scmp.lt.s32.totalorder %s42_s13, %s42_s13 }
  0x2c   :  { %p448_p5 = scmp.ne.s32.totalorder %s42_s13, %s447_s21  ;;  %p453_p7 = scmp.lt.s32.totalorder %s447_s21, %s447_s21 }
  0x2e   :  { %p454_p8 = por %p453_p7, %p452_p6 }
  0x30   :  { %p455_p9 = pnand %p454_p8, %p448_p5 }
  0x32   :  { %458 = shalt.err (!%p455_p9)
}
  0x33   :  { %44 = dma.hbm_to_vmem [thread:$0]  %s568_s2, 64, %s42_s13, [#allocation6]  }
  0x34   :  { %481 = dma.done.wait [#allocation3], 128  }
  0x35   :  { %482 = vsyncadd [#allocation3], 4294967168 }
  0x36   :  { %483 = dma.done.wait [#allocation6], 2112  }
  0x37   :  { %484 = vsyncadd [#allocation6], 4294965184  ;;  %v494_v0 = vmov 0   ;;  %v360_v1 = vld [vmem:[#allocation5 + $0x4] ss:$16 sps:$4 sm:$0xff]   ;;  %v375_v15 = vld [vmem:[#allocation2] sm:$0xff]   ;;  %v75_v18 = vlaneseq }
  0x38   :  { %216 = vmatprep.mubr.bf16.mxu0 %v494_v0  ;;  %259 = vmatprep.mubr.bf16.mxu1 %v494_v0  ;;  %v362_v2 = vld [vmem:[#allocation5] ss:$16 sps:$4 sm:$0xff]   ;;  %v363_v3 = vld [vmem:[#allocation5 + $0x24] ss:$16 sps:$4 sm:$0xff]   ;;  %v372_v6 = vld [vmem:[#allocation5 + $0xc] ss:$16 sps:$4 sm:$0xff]  }
  0x39   :  { %184 = vmatprep.subr.bf16.mxu0 %v360_v1  ;;  %v365_v4 = vld [vmem:[#allocation5 + $0x20] ss:$16 sps:$4 sm:$0xff]   ;;  %v366_v5 = vld [vmem:[#allocation5 + $0x44] ss:$16 sps:$4 sm:$0xff]   ;;  %v374_v7 = vld [vmem:[#allocation5 + $0x8] ss:$16 sps:$4 sm:$0xff]   ;;  %227 = vmatprep.subr.bf16.mxu1 %v372_v6 }
  0x3a   :  { %185 = vmatpush1.bf16.msra.mxu0 %v362_v2  ;;  %v368_v8 = vld [vmem:[#allocation5 + $0x40] ss:$16 sps:$4 sm:$0xff]   ;;  %v369_v9 = vld [vmem:[#allocation5 + $0x64] ss:$16 sps:$4 sm:$0xff]   ;;  %v376_v10 = vld [vmem:[#allocation5 + $0x2c] ss:$16 sps:$4 sm:$0xff]   ;;  %228 = vmatpush1.bf16.msra.mxu1 %v374_v7 }
  0x3b   :  { %186 = vmatprep.subr.bf16.mxu0 %v363_v3  ;;  %v378_v11 = vld [vmem:[#allocation5 + $0x28] ss:$16 sps:$4 sm:$0xff]   ;;  %229 = vmatprep.subr.bf16.mxu1 %v376_v10  ;;  %v379_v12 = vld [vmem:[#allocation5 + $0x4c] ss:$16 sps:$4 sm:$0xff]   ;;  %v371_v13 = vld [vmem:[#allocation5 + $0x60] ss:$16 sps:$4 sm:$0xff]  }
  0x3c   :  { %v381_v14 = vld [vmem:[#allocation5 + $0x48] ss:$16 sps:$4 sm:$0xff]   ;;  %v382_v16 = vld [vmem:[#allocation5 + $0x6c] ss:$16 sps:$4 sm:$0xff]   ;;  %vm180_vm0 = vcmask 523264   ;;  %v76_v19 = vshrl.u32 %v75_v18, 7 }
  0x3d   :  { %v384_v17 = vld [vmem:[#allocation5 + $0x68] ss:$16 sps:$4 sm:$0xff]   ;;  %v73_v21 = vld [vmem:[#allocation7] sm:$0xf]  ;;  %s495_s2 = smov [#allocation8]  }
  0x3e   :  { %187 = vmatpush1.bf16.msra.mxu0 %v365_v4  ;;  %230 = vmatpush1.bf16.msra.mxu1 %v378_v11  ;;  %v77_v20 = vsub.s32 0, %v76_v19  ;;  %v81_v22 = vsub.s32 1, %v76_v19  ;;  %v85_v39 = vsub.s32 2, %v76_v19  ;;  %v89_v41 = vsub.s32 3, %v76_v19  ;;  %s313_s23 = sshll.u32 %s495_s2, 4  ;;  %s314_s23 = int_to_ptr.vmem [resolvable:$true] %s313_s23 }
  0x3f   :  { %188 = vmatprep.subr.bf16.mxu0 %v366_v5  ;;  %231 = vmatprep.subr.bf16.mxu1 %v379_v12  ;;  %s459_s24 = scalar_lea.vmem %s314_s23, 256  ;;  %p464_p11 = scmp.lt.s32.totalorder %s314_s23, %s314_s23 }
  0x40   :  { %v78_v23 = vrot.slane %v73_v21, %v77_v20  ;;  %v82_v24 = vrot.slane %v73_v21, %v81_v22  ;;  %v86_v43 = vrot.slane %v73_v21, %v85_v39  ;;  %v90_v44 = vrot.slane %v73_v21, %v89_v41  ;;  %p460_p10 = scmp.ne.s32.totalorder %s314_s23, %s459_s24  ;;  %p465_p12 = scmp.lt.s32.totalorder %s459_s24, %s459_s24 }
  0x42   :  { %189 = vmatpush1.bf16.msra.mxu0 %v368_v8  ;;  %232 = vmatpush1.bf16.msra.mxu1 %v381_v14  ;;  %p466_p13 = por %p465_p12, %p464_p11 }
  0x43   :  { %190 = vmatprep.subr.bf16.mxu0 %v369_v9  ;;  %233 = vmatprep.subr.bf16.mxu1 %v382_v16 }
  0x44   :  { %p467_p0 = pnand %p466_p13, %p460_p10 }
  0x46   :  { %191 = vmatpush1.bf16.msra.mxu0 %v371_v13  ;;  %234 = vmatpush1.bf16.msra.mxu1 %v384_v17 }
  0x49   :  { %343 = vmatmul.mubr.msk.bf16.vlgmr.msra.gmra.mrb[0].mxu0 %vm180_vm0, %v375_v15  ;;  %344 = vmatmul.mubr.msk.bf16.vlgmr.msra.gmra.mrb[0].mxu1 %vm180_vm0, %v375_v15 }
 0x11c   :  { %v218_v25 = vpop.f32.mrb[0].mxu0  ;;  %v261_v37 = vpop.f32.mrb[0].mxu1 }
 0x11d   :  { %v219_v26 = vadd.f32 %v218_v25, %v78_v23  ;;  %v220_v27 = vpop.f32.mrb[1].mxu0  ;;  %v263_v38 = vpop.f32.mrb[1].mxu1  ;;  %v262_v49 = vadd.f32 %v261_v37, %v86_v43 }
 0x11e   :  { %v221_v28 = vadd.f32 %v220_v27, %v82_v24  ;;  %v222_v29 = vpop.f32.mrb[2].mxu0  ;;  %v265_v40 = vpop.f32.mrb[2].mxu1  ;;  %v264_v53 = vadd.f32 %v263_v38, %v90_v44 }
 0x11f   :  { %v274_v30 = vmul.f32 0.70710677, %v219_v26  ;;  %v223_v31 = vadd.f32 %v222_v29, %v78_v23  ;;  %v224_v32 = vpop.f32.mrb[3].mxu0  ;;  %v267_v42 = vpop.f32.mrb[3].mxu1  ;;  %v270_v47 = vmul.f32 0.5, %v219_v26  ;;  %v266_v62 = vadd.f32 %v265_v40, %v86_v43 }
 0x120   :  { %v275_v33 = vmul.f32 0.70710677, %v221_v28  ;;  %v225_v34 = vadd.f32 %v224_v32, %v82_v24  ;;  %v271_v51 = vmul.f32 0.5, %v221_v28  ;;  %v268_v1 = vadd.f32 %v267_v42, %v90_v44 }
 0x121   :  { %385 = verf.f32 %v274_v30  ;;  %v276_v35 = vmul.f32 0.70710677, %v223_v31  ;;  %v272_v55 = vmul.f32 0.5, %v223_v31 }
 0x122   :  { %387 = verf.f32 %v275_v33  ;;  %v277_v36 = vmul.f32 0.70710677, %v225_v34  ;;  %v273_v58 = vmul.f32 0.5, %v225_v34 }
 0x123   :  { %389 = verf.f32 %v276_v35 }
 0x124   :  { %391 = verf.f32 %v277_v36 }
 0x12b   :  { %v386_v45 = vpop.eup %385 }
 0x12c   :  { %v388_v46 = vpop.eup %387  ;;  %v282_v48 = vadd.f32 1.0, %v386_v45 }
 0x12d   :  { %v390_v50 = vpop.eup %389  ;;  %v283_v52 = vadd.f32 1.0, %v388_v46 }
 0x12e   :  { %v392_v54 = vpop.eup %391  ;;  %v284_v56 = vadd.f32 1.0, %v390_v50  ;;  %v286_v57 = vmul.f32 %v282_v48, %v270_v47 }
 0x12f   :  { %v285_v59 = vadd.f32 1.0, %v392_v54  ;;  %v287_v60 = vmul.f32 %v283_v52, %v271_v51 }
 0x130   :  { %v290_v61 = vmul.f32 %v286_v57, %v262_v49  ;;  %v288_v63 = vmul.f32 %v284_v56, %v272_v55 }
 0x131   :  { %v291_v0 = vmul.f32 %v287_v60, %v264_v53  ;;  %v289_v2 = vmul.f32 %v285_v59, %v273_v58 }
 0x132   :  { %v292_v3 = vmul.f32 %v288_v63, %v266_v62 }
 0x133   :  { %v347_v4 = vpack.c.bf16 %v291_v0, %v290_v61  ;;  %v293_v5 = vmul.f32 %v289_v2, %v268_v1 }
 0x135   :  { %306 = vst [vmem:[#allocation8] sm:$0xff] %v347_v4  ;;  %v348_v6 = vpack.c.bf16 %v293_v5, %v292_v3 }
 0x137   :  { %307 = vst [vmem:[#allocation8 + $0x8] sm:$0xff] %v348_v6 }
 0x138   :  { %470 = shalt.err (!%p467_p0)
}
 0x139   :  { %s471_s27 = scalar_lea.hbm %s569_s3, 256 }
 0x13a   :  { %p472_p1 = scmp.ne.s32.totalorder %s569_s3, %s471_s27  ;;  %p475_p2 = scmp.lt.u32.totalorder %s471_s27, %s569_s3 }
 0x13c   :  { %p477_p3 = pnand %p475_p2, %p472_p1 }
 0x13e   :  { %480 = shalt.err (!%p477_p3)
}
 0x13f   :  { %s496_s5 = smov 128   ;;  %s497_s6 = smov 8  }
 0x140   :  { %319 = dma.vmem_to_hbm [thread:$0]  %s314_s23, 256, %s569_s3, [#allocation4], %s496_s5, %s496_s5, %s497_s6  }
 0x141   :  { %485 = dma.done.wait [#allocation4], 256  }
 0x142   :  { %486 = vsyncadd [#allocation4], 4294967040 }
 0x143   :  { %323 = vsyncpa [#allocation3], 1 }
 0x144   :  { %324 = vsyncpa [#allocation6], 1 }
 0x145   :  { %325 = vsyncpa [#allocation4], 1 }

</bundles_post_ra>
